<compile_context>
chip_gen: v7x
topology: tpu7x:2x2x1
jax: 0.10.0
libtpu: 0.0.40
codegen_flags: <defaults>
</compile_context>

<pallas_src>
import functools

import jax
import jax.numpy as jnp
import numpy as np
from jax import lax
from jax.experimental import pallas as pl
from jax.experimental.pallas import tpu as pltpu


# --------------------------------------------------------------------------------------
# Recurrent kernel: LSTMCell + stack policy + stack update.  Emits [h || stack_top] per
# step; everything x-dependent and the decoder run as hoisted lane-dense GEMMs outside.
# --------------------------------------------------------------------------------------
def _stack_rnn_kernel(stack_depth, time_chunk,
                      gx_ref, px_ref, h0_ref, c0_ref, mem0_ref,
                      whh_ref, wband_ref,
                      hx_ref, hN_ref, cN_ref, memN_ref):
    D = stack_depth
    ti = pl.program_id(1)                      # time-chunk index (innermost, sequential)
    bb, ninp = h0_ref.shape

    # Recurrent state lives in the batch-block-resident OUTPUT refs (constant block
    # index along the time axis -> stays in VMEM across all time chunks).
    @pl.when(ti == 0)
    def _():
        hN_ref[...] = h0_ref[...]
        cN_ref[...] = c0_ref[...]
        memN_ref[...] = mem0_ref[...]

    whh = whh_ref[...]                         # (ninp, 4*ninp)       bf16
    wband = wband_ref[...]                     # (D*ninp, 2*(D+1))    bf16
    mm_dtype = whh.dtype

    def step(s, carry):
        h, c, mem = carry                      # f32: (bb,ninp), (bb,ninp), (bb,D*ninp)

        # ---------------- LSTMCell (PyTorch gate order i, f, g, o) ----------------
        # x @ W_ih^T + b_ih + b_hh was precomputed (gx); only h @ W_hh^T is serial.
        gates = gx_ref[s] + jnp.dot(h.astype(mm_dtype), whh,
                                    preferred_element_type=jnp.float32)
        i_g = jax.nn.sigmoid(gates[:, 0 * ninp:1 * ninp])
        f_g = jax.nn.sigmoid(gates[:, 1 * ninp:2 * ninp])
        g_g = jnp.tanh(gates[:, 2 * ninp:3 * ninp])
        o_g = jax.nn.sigmoid(gates[:, 3 * ninp:4 * ninp])
        c_new = f_g * c + i_g * g_g
        h_new = o_g * jnp.tanh(c_new)

        # ---------------- policy network ----------------
        # Conv1d(ninp->2, k=2) over the right-zero-padded stack == banded matmul on the
        # flattened stack.  px already holds x @ W_pi^T + b_pi + conv bias.
        logits = (jnp.dot(mem.astype(mm_dtype), wband,
                          preferred_element_type=jnp.float32)
                  + px_ref[s])                                        # (bb, 2*(D+1))
        logits = logits - jnp.max(logits, axis=1, keepdims=True)
        e = jnp.exp(logits)
        policy = e / jnp.sum(e, axis=1, keepdims=True)   # exact divide: recursive state
        p_stay = policy[:, :D + 1]
        p_push = policy[:, D + 1:]

        # ---------------- stack update (flat layout, 128-aligned lane windows) ----------
        # new_mem[i] = sum_k p_stay[k]*mem_ext[i+k]
        #            + (p_push_total*h_new            if i == 0
        #               sum_k p_push[k]*mem_ext[i-1+k] otherwise)
        mem_ext = jnp.concatenate([mem, jnp.zeros_like(mem)], axis=1)   # (bb, 2*D*ninp)
        stay = jnp.zeros_like(mem)
        push = jnp.zeros_like(mem)
        for k in range(D + 1):                                          # D small + static
            win = mem_ext[:, k * ninp:(k + D) * ninp]
            stay = stay + p_stay[:, k:k + 1] * win
            push = push + p_push[:, k:k + 1] * win
        p_push_tot = jnp.sum(p_push, axis=1, keepdims=True)             # (bb, 1)
        pushed_top = p_push_tot * h_new                                 # (bb, ninp)
        if D > 1:
            push_part = jnp.concatenate([pushed_top, push[:, :(D - 1) * ninp]], axis=1)
        else:
            push_part = pushed_top
        new_mem = stay + push_part                                      # (bb, D*ninp)

        # ---------------- emit [h || stack top] ----------------
        # read_stack + tied decoder run as one fused hoisted GEMM after the recurrence.
        hx_ref[s] = jnp.concatenate([h_new, new_mem[:, :ninp]],
                                    axis=1).astype(hx_ref.dtype)
        return h_new, c_new, new_mem

    h_f, c_f, mem_f = lax.fori_loop(
        0, time_chunk, step,
        (hN_ref[...], cN_ref[...], memN_ref[...]),
        unroll=True)
    hN_ref[...] = h_f
    cN_ref[...] = c_f
    memN_ref[...] = mem_f


# --------------------------------------------------------------------------------------
# Generic lane-dense tiled GEMM + bias (used for the hoisted input pre-GEMM and for the
# fused read_stack+decoder GEMM).  K is small (ninp or 2*ninp) and kept whole.
# --------------------------------------------------------------------------------------
def _gemm_bias_kernel(x_ref, w_ref, b_ref, o_ref):
    acc = jnp.dot(x_ref[...], w_ref[...], preferred_element_type=jnp.float32)
    o_ref[...] = (acc + b_ref[...]).astype(o_ref.dtype)


def _round_up(x, m):
    return ((x + m - 1) // m) * m


def _gemm_bias(x, w, b, *, tm=256, tn=256, out_dtype=jnp.float32):
    M, K = x.shape
    _, N = w.shape
    tm = min(tm, _round_up(M, 8))
    Mp = _round_up(M, tm)
    tn = min(tn, _round_up(N, 128))
    Np = _round_up(N, tn)
    if Mp != M:
        x = jnp.pad(x, ((0, Mp - M), (0, 0)))
    if Np != N:
        w = jnp.pad(w, ((0, 0), (0, Np - N)))
        b = jnp.pad(b, (0, Np - N))
    b = b.reshape(1, Np).astype(jnp.float32)

    out = pl.pallas_call(
        _gemm_bias_kernel,
        grid_spec=pltpu.PrefetchScalarGridSpec(
            num_scalar_prefetch=0,
            grid=(Mp // tm, Np // tn),
            in_specs=[pl.BlockSpec((tm, K), lambda i, j: (i, 0)),
                      pl.BlockSpec((K, tn), lambda i, j: (0, j)),
                      pl.BlockSpec((1, tn), lambda i, j: (0, j))],
            out_specs=pl.BlockSpec((tm, tn), lambda i, j: (i, j))),
        out_shape=jax.ShapeDtypeStruct((Mp, Np), out_dtype),
        compiler_params=pltpu.CompilerParams(
            dimension_semantics=("parallel", "parallel")),
    )(x, w, b)
    return out[:M, :N]


# --------------------------------------------------------------------------------------
# Chunk / block selection (generation-aware).
# --------------------------------------------------------------------------------------
def _num_tensorcores():
    try:
        kind = (getattr(jax.devices()[0], "device_kind", "") or "").lower()
    except Exception:
        return 1
    return 2 if "v7" in kind else 1          # v7x: 2 TensorCores/chip; v5e/v6e: 1


def _choose_batch_block(B):
    # Split the batch only when there is a second TensorCore to shard onto; on 1-TC
    # chips the split halves MXU M-occupancy and doubles sequential grid steps.
    if _num_tensorcores() >= 2 and B % 2 == 0 and (B // 2) % 8 == 0:
        return B // 2
    return B


def _choose_time_chunk(T, cap=16):
    for c in range(min(cap, T), 0, -1):
        if T % c == 0:
            return c
    return 1


# --------------------------------------------------------------------------------------
# Forward wrapper.
# --------------------------------------------------------------------------------------
def stack_rnn_forward(token_ids, h0, c0, mem0, params, *, stack_depth,
                      time_chunk=None, batch_block=None,
                      matmul_dtype=jnp.bfloat16,
                      row_tile=256, vocab_tile=256):
    """Pallas implementation of StackRNNModel.forward (eval-mode dropout)."""
    T, B = token_ids.shape
    ntoken, ninp = params["emb_w"].shape
    D = stack_depth
    md = matmul_dtype

    Tc = time_chunk if time_chunk is not None else _choose_time_chunk(T)
    assert T % Tc == 0, "sequence length must be a multiple of the time chunk"
    bb = batch_block if batch_block is not None else _choose_batch_block(B)
    assert B % bb == 0, "batch must be a multiple of the batch block"

    # Embedding lookup (gather) stays as XLA glue; nn.Embedding(padding_idx=0) is a
    # plain gather in the forward pass.
    # TODO(synk): for long sequences, pass token_ids via scalar prefetch and gather
    # rows in-kernel to avoid materializing (T,B,ninp) activations in HBM.
    emb = jnp.take(params["emb_w"], token_ids, axis=0)                  # (T, B, ninp) f32
    x2d = emb.reshape(T * B, ninp).astype(md)

    # ---- hoisted input pre-GEMM:  x @ [W_ih^T | W_pi^T]  + folded biases --------------
    wih_t = params["w_ih"].T.astype(jnp.float32)                        # (ninp, 4*ninp)
    wpi_t = params["w_pi"].T.astype(jnp.float32)                        # (ninp, 2*(D+1))
    wx = jnp.concatenate([wih_t, wpi_t], axis=1).astype(md)             # (ninp, 4n+2(D+1))
    b_lstm = (params["b_ih"] + params["b_hh"]).astype(jnp.float32)
    conv_bias_exp = jnp.concatenate([
        jnp.full((D + 1,), params["conv_b"][0], jnp.float32),
        jnp.full((D + 1,), params["conv_b"][1], jnp.float32)])
    b_pol = params["b_pi"].astype(jnp.float32) + conv_bias_exp
    bx = jnp.concatenate([b_lstm, b_pol])

    Nx = 4 * ninp + 2 * (D + 1)
    gx_all = _gemm_bias(x2d, wx, bx, tm=row_tile, tn=vocab_tile)        # (T*B, Nx) f32
    gates_x = gx_all[:, :4 * ninp].reshape(T, B, 4 * ninp)
    pol_x = gx_all[:, 4 * ninp:Nx].reshape(T, B, 2 * (D + 1))

    # ---- recurrent-kernel weights ------------------------------------------------------
    whh_t = params["w_hh"].T.astype(md)                                 # (ninp, 4*ninp)

    # Banded conv-as-matmul weight: column (c, k) holds the two Conv1d taps that touch
    # stack rows k and k+1 (zero past the stack bottom -> exact padded-conv semantics).
    cw = params["conv_w"].astype(jnp.float32)                           # (2, ninp, 2)
    wband = jnp.zeros((D * ninp, 2 * (D + 1)), jnp.float32)
    for c in range(2):                                                  # stay, push
        for k in range(D + 1):
            col = c * (D + 1) + k
            if k < D:
                wband = wband.at[k * ninp:(k + 1) * ninp, col].set(cw[c, :, 0])
            if k + 1 < D:
                wband = wband.at[(k + 1) * ninp:(k + 2) * ninp, col].set(cw[c, :, 1])
    wband = wband.astype(md)

    mem0_flat = mem0.reshape(B, D * ninp).astype(jnp.float32)

    kernel = functools.partial(_stack_rnn_kernel, D, Tc)

    def w_spec(*shape):
        # Constant block index -> DMA'd once, resident across the whole grid.
        # TODO(synk): at LM-scale ninp add pipeline_mode=pl.Buffered(1) here and an
        # explicit vmem_limit_bytes (v7x has only 64 MiB physical VMEM).
        return pl.BlockSpec(shape, lambda bi, ti: (0,) * len(shape))

    grid_spec = pltpu.PrefetchScalarGridSpec(
        num_scalar_prefetch=0,
        # batch axis first ("parallel", shardable across TCs on v7x); time axis LAST and
        # "arbitrary" so the state carried in the output refs is sequential.
        grid=(B // bb, T // Tc),
        in_specs=[
            pl.BlockSpec((Tc, bb, 4 * ninp), lambda bi, ti: (ti, bi, 0)),     # gates_x
            pl.BlockSpec((Tc, bb, 2 * (D + 1)), lambda bi, ti: (ti, bi, 0)),  # pol_x
            pl.BlockSpec((bb, ninp), lambda bi, ti: (bi, 0)),                 # h0
            pl.BlockSpec((bb, ninp), lambda bi, ti: (bi, 0)),                 # c0
            pl.BlockSpec((bb, D * ninp), lambda bi, ti: (bi, 0)),             # mem0 (flat)
            w_spec(ninp, 4 * ninp),                                           # W_hh^T
            w_spec(D * ninp, 2 * (D + 1)),                                    # banded conv
        ],
        out_specs=[
            pl.BlockSpec((Tc, bb, 2 * ninp), lambda bi, ti: (ti, bi, 0)),     # [h || top]
            pl.BlockSpec((bb, ninp), lambda bi, ti: (bi, 0)),                 # final h
            pl.BlockSpec((bb, ninp), lambda bi, ti: (bi, 0)),                 # final c
            pl.BlockSpec((bb, D * ninp), lambda bi, ti: (bi, 0)),             # final mem
        ],
    )

    out_shape = (
        jax.ShapeDtypeStruct((T, B, 2 * ninp), md),
        jax.ShapeDtypeStruct((B, ninp), jnp.float32),
        jax.ShapeDtypeStruct((B, ninp), jnp.float32),
        jax.ShapeDtypeStruct((B, D * ninp), jnp.float32),
    )

    hx, h_f, c_f, mem_f_flat = pl.pallas_call(
        kernel,
        grid_spec=grid_spec,
        out_shape=out_shape,
        compiler_params=pltpu.CompilerParams(
            dimension_semantics=("parallel", "arbitrary")),
    )(gates_x, pol_x, h0.astype(jnp.float32), c0.astype(jnp.float32), mem0_flat,
      whh_t, wband)

    # ---- fused read_stack + tied decoder: one (T*B, 2*ninp) @ (2*ninp, ntoken) GEMM ----
    # decoded = ([h||top] @ W_read^T) @ emb_w^T + b == [h||top] @ (W_read^T @ emb_w^T) + b
    wdec = jnp.dot(params["w_read"].T, params["emb_w"].T,
                   preferred_element_type=jnp.float32).astype(md)       # (2*ninp, ntoken)
    dec = _gemm_bias(hx.reshape(T * B, 2 * ninp), wdec,
                     params["dec_b"].astype(jnp.float32),
                     tm=row_tile, tn=vocab_tile)                        # (T*B, ntoken) f32
    decoded = dec.reshape(T, B, ntoken)

    mem_f = mem_f_flat.reshape(B, D, ninp)
    return decoded, (h_f, c_f), mem_f


# --------------------------------------------------------------------------------------
# Pure-JAX f32 reference of the PyTorch forward (eval mode), used for a tolerance check.
# --------------------------------------------------------------------------------------
def _reference_forward(token_ids, h0, c0, mem0, params, *, stack_depth):
    D = stack_depth
    ntoken, ninp = params["emb_w"].shape
    emb = jnp.take(params["emb_w"], token_ids, axis=0)
    h, c, mem = h0, c0, mem0
    reads = []
    cw = params["conv_w"]
    for t in range(emb.shape[0]):
        x = emb[t]
        gates = (x @ params["w_ih"].T + params["b_ih"]
                 + h @ params["w_hh"].T + params["b_hh"])
        i_g = jax.nn.sigmoid(gates[:, :ninp])
        f_g = jax.nn.sigmoid(gates[:, ninp:2 * ninp])
        g_g = jnp.tanh(gates[:, 2 * ninp:3 * ninp])
        o_g = jax.nn.sigmoid(gates[:, 3 * ninp:])
        c = f_g * c + i_g * g_g
        h = o_g * jnp.tanh(c)
        mem_pad = jnp.concatenate([mem, jnp.zeros((mem.shape[0], 2, ninp))], axis=1)
        stay = (mem_pad[:, :D + 1] @ cw[0, :, 0] + mem_pad[:, 1:D + 2] @ cw[0, :, 1]
                + params["conv_b"][0])
        push = (mem_pad[:, :D + 1] @ cw[1, :, 0] + mem_pad[:, 1:D + 2] @ cw[1, :, 1]
                + params["conv_b"][1])
        policy = jax.nn.softmax(jnp.concatenate([stay, push], axis=1)
                                + x @ params["w_pi"].T + params["b_pi"], axis=1)
        p_stay, p_push = policy[:, :D + 1], policy[:, D + 1:]
        mem_ext = jnp.concatenate([mem, jnp.zeros_like(mem)], axis=1)
        m_stay = jnp.stack([mem_ext[:, k:k + D] for k in range(D + 1)], axis=1)
        pushed = jnp.broadcast_to(h[:, None, None, :], (h.shape[0], D + 1, 1, ninp))
        m_push = jnp.concatenate([pushed, m_stay[:, :, :-1]], axis=2)
        mem = (jnp.sum(m_stay * p_stay[:, :, None, None], axis=1)
               + jnp.sum(m_push * p_push[:, :, None, None], axis=1))
        reads.append(jnp.concatenate([h, mem[:, 0]], axis=1) @ params["w_read"].T)
    out = jnp.stack(reads, axis=0)
    decoded = out.reshape(-1, ninp) @ params["emb_w"].T + params["dec_b"]
    return decoded.reshape(out.shape[0], out.shape[1], ntoken), (h, c), mem


if __name__ == "__main__":
    # Small but hardware-tile-friendly shapes (sublane/lane aligned).
    ntoken, ninp, stack_depth = 256, 128, 4
    T, B = 16, 16

    key = jax.random.PRNGKey(0)
    ks = jax.random.split(key, 11)
    initrange = 0.1
    stdv = 1.0 / np.sqrt(ninp)
    conv_stdv = 1.0 / np.sqrt(ninp * 2)
    read_stdv = 1.0 / np.sqrt(2 * ninp)

    emb_w = jax.random.uniform(ks[0], (ntoken, ninp), jnp.float32, -initrange, initrange)
    emb_w = emb_w.at[0].set(0.0)  # nn.Embedding(padding_idx=0) zeroes the padding row

    params = dict(
        emb_w=emb_w,
        dec_b=jnp.zeros((ntoken,), jnp.float32),
        w_ih=jax.random.uniform(ks[1], (4 * ninp, ninp), jnp.float32, -stdv, stdv),
        w_hh=jax.random.uniform(ks[2], (4 * ninp, ninp), jnp.float32, -stdv, stdv),
        b_ih=jax.random.uniform(ks[3], (4 * ninp,), jnp.float32, -stdv, stdv),
        b_hh=jax.random.uniform(ks[4], (4 * ninp,), jnp.float32, -stdv, stdv),
        conv_w=jax.random.uniform(ks[5], (2, ninp, 2), jnp.float32, -conv_stdv, conv_stdv),
        conv_b=jax.random.uniform(ks[6], (2,), jnp.float32, -conv_stdv, conv_stdv),
        w_pi=jax.random.uniform(ks[7], (2 * (stack_depth + 1), ninp), jnp.float32, -stdv, stdv),
        b_pi=jax.random.uniform(ks[8], (2 * (stack_depth + 1),), jnp.float32, -stdv, stdv),
        w_read=jax.random.uniform(ks[9], (ninp, 2 * ninp), jnp.float32, -read_stdv, read_stdv),
    )

    token_ids = jax.random.randint(ks[10], (T, B), 0, ntoken)
    h0 = jnp.zeros((B, ninp), jnp.float32)                      # init_hidden
    c0 = jnp.zeros((B, ninp), jnp.float32)
    mem0 = jnp.zeros((B, stack_depth, ninp), jnp.float32)       # init_memory

    decoded, (h_f, c_f), mem_f = stack_rnn_forward(
        token_ids, h0, c0, mem0, params, stack_depth=stack_depth)
    jax.block_until_ready((decoded, h_f, c_f, mem_f))

    assert decoded.shape == (T, B, ntoken)
    assert h_f.shape == (B, ninp) and c_f.shape == (B, ninp)
    assert mem_f.shape == (B, stack_depth, ninp)
    assert bool(jnp.all(jnp.isfinite(decoded)))

    # Numerical check against the f32 reference (bf16 MXU operands -> loose tolerance).
    ref_dec, (ref_h, ref_c), ref_mem = _reference_forward(
        token_ids, h0, c0, mem0, params, stack_depth=stack_depth)
    assert float(jnp.max(jnp.abs(decoded - ref_dec))) < 5e-2
    assert float(jnp.max(jnp.abs(h_f - ref_h))) < 5e-2
    assert float(jnp.max(jnp.abs(c_f - ref_c))) < 5e-2
    assert float(jnp.max(jnp.abs(mem_f - ref_mem))) < 5e-2

    print("KERNEL_OK")
</pallas_src>

<mosaic_0001>
module attributes {stable_mosaic.version = 11 : i64} {
  func.func @_gemm_bias_kernel(%arg0: i32, %arg1: i32, %arg2: memref<256x128xbf16, #tpu.memory_space<vmem>>, %arg3: memref<128x256xbf16, #tpu.memory_space<vmem>>, %arg4: memref<1x256xf32, #tpu.memory_space<vmem>>, %arg5: memref<256x256xf32, #tpu.memory_space<vmem>>) attributes {dimension_semantics = [#tpu.dimension_semantics<parallel>, #tpu.dimension_semantics<parallel>], iteration_bounds = array<i64: 1, 3>, scalar_prefetch = 0 : i64, scratch_operands = 0 : i64, tpu.core_type = #tpu.core_type<tc>, window_params = [{transform_indices = @transform_0, window_bounds = array<i64: 256, 128>}, {transform_indices = @transform_1, window_bounds = array<i64: 128, 256>}, {transform_indices = @transform_2, window_bounds = array<i64: 1, 256>}, {transform_indices = @transform_3, window_bounds = array<i64: 256, 256>}]} {
    %c0 = arith.constant 0 : index
    %c0_0 = arith.constant 0 : index
    %0 = vector.load %arg2[%c0, %c0_0] : memref<256x128xbf16, #tpu.memory_space<vmem>>, vector<256x128xbf16>
    %c0_1 = arith.constant 0 : index
    %c0_2 = arith.constant 0 : index
    %1 = vector.load %arg3[%c0_1, %c0_2] : memref<128x256xbf16, #tpu.memory_space<vmem>>, vector<128x256xbf16>
    %cst = arith.constant dense<0.000000e+00> : vector<256x256xf32>
    %2 = tpu.matmul %0, %1, %cst {dimension_numbers = #tpu.dot_dimension_numbers<[1], [0], [0], [1], [0, 0, 1, 1], [], []>} : vector<256x128xbf16>, vector<128x256xbf16>, vector<256x256xf32> -> vector<256x256xf32>
    %c0_3 = arith.constant 0 : index
    %c0_4 = arith.constant 0 : index
    %3 = vector.load %arg4[%c0_3, %c0_4] : memref<1x256xf32, #tpu.memory_space<vmem>>, vector<1x256xf32>
    %4 = vector.broadcast %3 : vector<1x256xf32> to vector<256x256xf32>
    %5 = arith.addf %2, %4 : vector<256x256xf32>
    %c0_5 = arith.constant 0 : index
    %c0_6 = arith.constant 0 : index
    %6 = vector.load %arg5[%c0_5, %c0_6] : memref<256x256xf32, #tpu.memory_space<vmem>>, vector<256x256xf32>
    tpu.vector_store %arg5[%c0_5, %c0_6], %5 {strides = array<i32>} : memref<256x256xf32, #tpu.memory_space<vmem>>, vector<256x256xf32>,
    return
  }
  func.func @transform_0(%arg0: i32, %arg1: i32) -> (i32, i32) {
    %c0_i32 = arith.constant 0 : i32
    %c0_i32_0 = arith.constant 0 : i32
    return %arg0, %c0_i32 : i32, i32
  }
  func.func @transform_1(%arg0: i32, %arg1: i32) -> (i32, i32) {
    %c0_i32 = arith.constant 0 : i32
    %c0_i32_0 = arith.constant 0 : i32
    return %c0_i32, %arg1 : i32, i32
  }
  func.func @transform_2(%arg0: i32, %arg1: i32) -> (i32, i32) {
    %c0_i32 = arith.constant 0 : i32
    %c0_i32_0 = arith.constant 0 : i32
    return %c0_i32, %arg1 : i32, i32
  }
  func.func @transform_3(%arg0: i32, %arg1: i32) -> (i32, i32) {
    %c0_i32 = arith.constant 0 : i32
    return %arg0, %arg1 : i32, i32
  }
}

</mosaic_0001>

<bundles_post_ra>
// kernel: tpu_custom_call.1
= control target key start
LH: loop header
LB: loop body
LE: loop exit
PB: predicated region body
PF: predicated region fallthrough
CT: control target
= control target key end

     0   :  { %8 = vsyncpa [#allocation3], 0  ;;  %s1620_s0 = inlined_call_operand.hbm [shape: bf16[256,128], index: 0, kind: input, shape index: {}]   ;;  %s1621_s1 = inlined_call_operand.hbm [shape: bf16[128,768], index: 1, kind: input, shape index: {}]   ;;  %s1622_s2 = inlined_call_operand.vmem [shape: f32[1,768], index: 2, kind: input, shape index: {}]   ;;  %s1623_s3 = inlined_call_operand.hbm [shape: f32[256,768], index: 3, kind: output, shape index: {}]  }
   0x1   :  { %9 = vsyncpa [#allocation6], 0 }
   0x2   :  { %11 = vsyncpa [#allocation6 + $0x1], 0 }
   0x3   :  { %12 = vsyncpa [#allocation4], 0 }
   0x4   :  { %14 = vsyncpa [#allocation4 + $0x1], 0  ;;  %s1235_s12 = smov 0   ;;  %s1237_s13 = smov 0  }
   0x5   :  { %s1239_s14 = smov 0   ;;  %s1241_s15 = smov 0  }
   0x6   :  { %s1243_s16 = smov 0   ;;  %s1245_s17 = smov 0  }
   0x7 LB: > { %s867_s18 = sadd.s32 4294967295, %s1201_s17   ;;  %s868_s19 = sadd.s32 4294967294, %s1201_s17   ;;  %s1201_s17 = sphi %s1245_s17, %s20_s17   ;;  %s1197_s16 = sphi %s1243_s16, %s1648_s16   ;;  %s1193_s15 = sphi %s1241_s15, %s1647_s15   ;;  %s1189_s14 = sphi %s1239_s14, %s1646_s14   ;;  %s1185_s13 = sphi %s1237_s13, %s1645_s13   ;;  %s1181_s12 = sphi %s1235_s12, %s1644_s12  }
   0x8   : > { %p72_p0 = scmp.ne.s32.totalorder %s1189_s14, %s1185_s13  ;;  %p73_p1 = scmp.eq.s32.totalorder %s1201_s17, 0 }
   0x9   : > { %p78_p2 = scmp.ne.s32.totalorder %s1185_s13, %s1181_s12  ;;  %p1272_p3 = scmp.eq.s32.totalorder %s867_s18, 0 }
   0xa   : > { %p1276_p4 = por %p73_p1, %p72_p0  ;;  %p130_p5 = scmp.eq.s32.totalorder %s867_s18, 2 }
   0xb   : > { %s1630_s20 = scalar_select %p1272_p3, 1, 0 }
   0xc   : > { %p1282_p6 = por %p1272_p3, %p78_p2  ;;  %p136_p7 = scmp.eq.s32.totalorder %s868_s19, 2 }
   0xd   : > { %p1286_p8 = por %p130_p5, %p72_p0  ;;  %p869_p9 = scmp.ge.s32.totalorder %s1201_s17, 1 }
   0xe   : > { %s1632_s22 = scalar_select %p1282_p6, 1, 0 }
   0xf   : > { %s1633_s23 = scalar_select %p1286_p8, 1, 0 }
  0x10   : > { %p1291_p10 = por %p136_p7, %p78_p2  ;;  %p143_p11 = scmp.lt.s32.totalorder %s1201_s17, 4 }
  0x11   : > { %s1203_s26 = smov [#allocation2]   ;;  %p956_p0 = scmp.lt.s32.totalorder %s1201_s17, 3 }
  0x12   : > { %s1634_s24 = scalar_select %p1291_p10, 1, 0 }
  0x13   : > { %p1296_p12 = pnand %p869_p9, %p143_p11  ;;  %s158_s27 = sshll.u32 %s1203_s26, 4  ;;  %s159_s27 = int_to_ptr.vmem [resolvable:$true] %s158_s27 }
  0x14   : > { %p1311_p2 = pnand %p956_p0, %p1276_p4  ;;  %s29_s30 = sadd.s32 1, %s1197_s16 }
  0x15   : > { %s1635_s25 = scalar_select %p1296_p12, 1, 0 }
  0x16   : > { %p943_p13 = pneg %p1296_p12  ;;  %s1057_s6 = scalar_lea.hbm %s1620_s0, 2048 }
  0x17   : > { %s1637_s29 = scalar_select %p1311_p2, 1, 0 }
  0x18   : > { %p1305_p1 = pnand %p943_p13, %p1272_p3  ;;  %p1058_p5 = scmp.ne.s32.totalorder %s1620_s0, %s1057_s6 }
  0x19   : > { %p1064_p4 = scmp.lt.u32.totalorder %s1057_s6, %s1620_s0 }
  0x1a   : > { %p1059_p7 = pneg %p1305_p1 }
  0x1c   : > { %p1060_p9 = pnand %p1059_p7, %p1058_p5 }
  0x1e   : > { %p1061_p11 = pneg %p1060_p9 }
  0x20   : > { %p1066_p13 = pnand %p1064_p4, %p1061_p11 }
  0x22   : > { %1069 = shalt.err (!%p1066_p13)
}
  0x23   : > { %s1070_s11 = scalar_lea.vmem %s159_s27, 2048  ;;  %p1078_p6 = scmp.lt.s32.totalorder %s159_s27, %s159_s27 }
  0x24   : > { %p1071_p0 = scmp.ne.s32.totalorder %s159_s27, %s1070_s11  ;;  %p1079_p3 = scmp.lt.s32.totalorder %s1070_s11, %s1070_s11 }
  0x26   : > { %p1073_p10 = pnand %p1071_p0, %p1059_p7  ;;  %p1080_p12 = por %p1079_p3, %p1078_p6 }
  0x28   : > { %p1074_p8 = pneg %p1073_p10 }
  0x2a   : > { %p1081_p2 = pnand %p1080_p12, %p1074_p8 }
  0x2c   : > { %1084 = shalt.err (!%p1081_p2)
}
  0x2d   : > { %s1204_s18 = smov 64   ;;  %s1205_s19 = smov 4  }
  0x2e   : > { %946 = dma.hbm_to_vmem [thread:$0]  (!%p1305_p1), %s1620_s0, 2048, %s159_s27, [#allocation3], %s1204_s18, %s1204_s18, %s1205_s19  }
  0x2f   : > { %p30_p5 = scmp.ge.s32.totalorder %s29_s30, 3  ;;  %s65_s4 = sadd.s32 1, %s1189_s14 }
  0x30   : > { %s172_s5 = sand.u32 1, %s1189_s14   ;;  %s917_s8 = sshll.u32 %s1197_s16, 7 }
  0x31   : > { %s1650_s30 = smov (%p30_p5, %s29_s30), 0  ;;  %s872_s6 = sshll.u32 %s172_s5, 7 }
  0x32   : > { %s62_s7 = ssub.s32 %s1197_s16, %s1650_s30  ;;  %s1342_s28 = scalar_lea.hbm %s1621_s1, %s917_s8 }
  0x33   : > { %p63_p3 = scmp.eq.s32.totalorder %s62_s7, 0  ;;  %s176_s27 = scalar_lea.vmem [#allocation5], %s872_s6 }
  0x34   : > { %s183_s11 = sshll.u32 %s176_s27, 4  ;;  %s1349_s19 = scalar_lea.sflag [#allocation6], %s172_s5  ;;  %s1347_s11 = int_to_ptr.vmem [resolvable:$true] %s183_s11 }
  0x35   : > { %s1345_s18 = scalar_select %p63_p3, %s1189_s14, %s65_s4  }
  0x36   : > { %s1085_s21 = scalar_lea.hbm %s1342_s28, 2048  ;;  %p1638_p8 = scmp.ne.s32.totalorder %s1637_s29, 0 }
  0x37   : > { %p1086_p6 = scmp.ne.s32.totalorder %s1342_s28, %s1085_s21  ;;  %s1090_s8 = scalar_lea.hbm %s1621_s1, 6144 }
  0x38   : > { %p1087_p10 = pneg %p1638_p8  ;;  %p1091_p2 = scmp.lt.u32.totalorder %s1342_s28, %s1621_s1 }
  0x39   : > { %p1092_p7 = scmp.lt.u32.totalorder %s1090_s8, %s1085_s21  ;;  %p1094_p11 = scmp.lt.u32.totalorder %s1085_s21, %s1342_s28 }
  0x3a   : > { %p1088_p12 = pnand %p1087_p10, %p1086_p6 }
  0x3b   : > { %p1093_p9 = por %p1092_p7, %p1091_p2 }
  0x3c   : > { %p1089_p1 = pneg %p1088_p12 }
  0x3d   : > { %p1095_p4 = por %p1094_p11, %p1093_p9 }
  0x3f   : > { %p1096_p13 = pnand %p1095_p4, %p1089_p1 }
  0x41   : > { %1099 = shalt.err (!%p1096_p13)
}
  0x42   : > { %s1100_s4 = scalar_lea.vmem %s1347_s11, 2048  ;;  %s1206_s5 = smov [#allocation5]  }
  0x43   : > { %p1101_p0 = scmp.ne.s32.totalorder %s1347_s11, %s1100_s4  ;;  %s1105_s10 = sshll.u32 %s1206_s5, 4  ;;  %s1106_s10 = int_to_ptr.vmem [resolvable:$false] %s1105_s10 }
  0x44   : > { %s1107_s27 = scalar_lea.vmem %s1106_s10, 4096  ;;  %p1108_p6 = scmp.lt.s32.totalorder %s1347_s11, %s1106_s10 }
  0x45   : > { %p1103_p5 = pnand %p1101_p0, %p1087_p10  ;;  %p1109_p12 = scmp.lt.s32.totalorder %s1107_s27, %s1100_s4 }
  0x47   : > { %p1104_p3 = pneg %p1103_p5  ;;  %p1110_p2 = por %p1109_p12, %p1108_p6 }
  0x49   : > { %p1111_p7 = pnand %p1110_p2, %p1104_p3 }
  0x4b   : > { %1114 = shalt.err (!%p1111_p7)
}
  0x4c   : > { %s1207_s21 = smov 384   ;;  %s1208_s26 = smov 128  }
  0x4d   : > { %s1209_s7 = smov 8   ;;  %p1639_p10 = scmp.ne.s32.totalorder %s1635_s25, 0 }
  0x4e   : > { %950 = dma.hbm_to_vmem [thread:$0]  (!%p1638_p8), %s1342_s28, 2048, %s1347_s11, %s1349_s19, %s1207_s21, %s1208_s26, %s1209_s7  }
  0x4f   : > { %203 = sbr.rel (%p1639_p10) target bundleno = 414 (0x19e), region = 32  ;;  %p1640_p1 = scmp.ne.s32.totalorder (!%p1639_p10), %s1630_s20, 0 }
  0x56   : > { %1168 = dma.done.wait (%p1640_p1), [#allocation3], 2048  }
  0x57   : > { %1170 = vsyncadd (%p1640_p1), [#allocation3], 4294965248  ;;  %s1384_s8 = sand.u32 1, %s1185_s13   ;;  %p1641_p8 = scmp.ne.s32.totalorder %s1632_s22, 0 }
  0x58   : > { %s877_s6 = sshll.u32 %s1384_s8, 7  ;;  %s210_s9 = scalar_lea.sflag [#allocation6], %s1384_s8 }
  0x59   : > { %s1388_s4 = scalar_lea.vmem [#allocation5], %s877_s6 }
  0x5a   : > { %1172 = dma.done.wait (%p1641_p8), %s210_s9, 2048  }
  0x5b   : > { %1174 = vsyncadd (%p1641_p8), %s210_s9, 4294965248  ;;  %v1210_v0 = vmov 0   ;;  %v1017_v1 = vld [vmem:[%s1388_s4 + $0x4] ss:$8 sps:$4 sm:$0xff]   ;;  %v1019_v2 = vld [vmem:[%s1388_s4] ss:$8 sps:$4 sm:$0xff]   ;;  %v300_v33 = vlaneseq }
  0x5c   : > { %518 = vmatprep.mubr.bf16.mxu0 %v1210_v0  ;;  %598 = vmatprep.mubr.bf16.mxu1 %v1210_v0  ;;  %v1020_v3 = vld [vmem:[%s1388_s4 + $0x14] ss:$8 sps:$4 sm:$0xff]   ;;  %v1022_v4 = vld [vmem:[%s1388_s4 + $0x10] ss:$8 sps:$4 sm:$0xff]   ;;  %v1023_v5 = vld [vmem:[%s1388_s4 + $0x24] ss:$8 sps:$4 sm:$0xff]  }
  0x5d   : > { %486 = vmatprep.subr.bf16.mxu0 %v1017_v1  ;;  %919 = vmatprep.subr.bf16.mxu1 %v1017_v1  ;;  %v1025_v6 = vld [vmem:[%s1388_s4 + $0x20] ss:$8 sps:$4 sm:$0xff]   ;;  %v1026_v7 = vld [vmem:[%s1388_s4 + $0x34] ss:$8 sps:$4 sm:$0xff]   ;;  %v1028_v8 = vld [vmem:[%s1388_s4 + $0x30] ss:$8 sps:$4 sm:$0xff]  }
  0x5e   : > { %487 = vmatpush1.bf16.msra.mxu0 %v1019_v2  ;;  %927 = vmatpush1.bf16.msra.mxu1 %v1019_v2  ;;  %v1029_v9 = vld [vmem:[%s1388_s4 + $0x44] ss:$8 sps:$4 sm:$0xff]   ;;  %v1031_v10 = vld [vmem:[%s1388_s4 + $0x40] ss:$8 sps:$4 sm:$0xff]   ;;  %v1032_v11 = vld [vmem:[%s1388_s4 + $0x54] ss:$8 sps:$4 sm:$0xff]  }
  0x5f   : > { %488 = vmatprep.subr.bf16.mxu0 %v1020_v3  ;;  %920 = vmatprep.subr.bf16.mxu1 %v1020_v3  ;;  %v1034_v12 = vld [vmem:[%s1388_s4 + $0x50] ss:$8 sps:$4 sm:$0xff]   ;;  %v1035_v13 = vld [vmem:[%s1388_s4 + $0x64] ss:$8 sps:$4 sm:$0xff]   ;;  %v1037_v14 = vld [vmem:[%s1388_s4 + $0x60] ss:$8 sps:$4 sm:$0xff]  }
  0x60   : > { %v1038_v15 = vld [vmem:[%s1388_s4 + $0x74] ss:$8 sps:$4 sm:$0xff]   ;;  %v1040_v16 = vld [vmem:[%s1388_s4 + $0x70] ss:$8 sps:$4 sm:$0xff]   ;;  %v1041_v17 = vld [vmem:[#allocation2] sm:$0xff]   ;;  %s879_s20 = sshll.u32 %s1193_s15, 1 }
  0x61   : > { %v1042_v18 = vld [vmem:[#allocation2 + $0x40] sm:$0xff]   ;;  %v1043_v19 = vld [vmem:[#allocation2 + $0x8] sm:$0xff]   ;;  %v1045_v21 = vld [vmem:[#allocation2 + $0x10] sm:$0xff]   ;;  %p243_p9 = scmp.lt.s32.totalorder %s879_s20, 5  ;;  %v301_v34 = vshrl.u32 %v300_v33, 7  ;;  %s878_s28 = sshll.u32 %s1384_s8, 9 }
  0x62   : > { %489 = vmatpush1.bf16.msra.mxu0 %v1022_v4  ;;  %928 = vmatpush1.bf16.msra.mxu1 %v1022_v4  ;;  %v1044_v20 = vld [vmem:[#allocation2 + $0x48] sm:$0xff]   ;;  %v1046_v22 = vld [vmem:[#allocation2 + $0x50] sm:$0xff]   ;;  %v1047_v23 = vld [vmem:[#allocation2 + $0x18] sm:$0xff]   ;;  %s1439_s11 = scalar_lea.vmem [#allocation7], %s878_s28  ;;  %s918_s19 = sshll.u32 %s1193_s15, 8 }
  0x63   : > { %490 = vmatprep.subr.bf16.mxu0 %v1023_v5  ;;  %921 = vmatprep.subr.bf16.mxu1 %v1023_v5  ;;  %v1048_v24 = vld [vmem:[#allocation2 + $0x58] sm:$0xff]   ;;  %v1049_v25 = vld [vmem:[#allocation2 + $0x20] sm:$0xff]   ;;  %v1051_v27 = vld [vmem:[#allocation2 + $0x28] sm:$0xff]   ;;  %s1652_s20 = smov (!%p243_p9, %s879_s20), 5  ;;  %v302_v35 = vsub.s32 0, %v301_v34  ;;  %v306_v37 = vsub.s32 1, %v301_v34  ;;  %s1558_s27 = scalar_lea.hbm %s1623_s3, %s918_s19 }
  0x64   : > { %v1050_v26 = vld [vmem:[#allocation2 + $0x60] sm:$0xff]   ;;  %v1052_v28 = vld [vmem:[#allocation2 + $0x68] sm:$0xff]   ;;  %v1053_v29 = vld [vmem:[#allocation2 + $0x30] sm:$0xff]   ;;  %s245_s29 = scalar_lea.vmem %s1622_s2, %s1652_s20  ;;  %s760_s5 = sshll.u32 %s1439_s11, 4  ;;  %s1564_s5 = int_to_ptr.vmem [resolvable:$true] %s760_s5 }
  0x65   : > { %v1054_v30 = vld [vmem:[#allocation2 + $0x70] sm:$0xff]   ;;  %v1055_v31 = vld [vmem:[#allocation2 + $0x38] sm:$0xff]   ;;  %v298_v36 = vld [vmem:[%s245_s29] sm:$0x3]  ;;  %s744_s21 = scalar_lea.sflag [#allocation4], %s1384_s8  ;;  %s1115_s26 = scalar_lea.vmem %s1564_s5, 8192 }
  0x66   : > { %491 = vmatpush1.bf16.msra.mxu0 %v1025_v6  ;;  %929 = vmatpush1.bf16.msra.mxu1 %v1025_v6  ;;  %v1056_v32 = vld [vmem:[#allocation2 + $0x78] sm:$0xff]   ;;  %v1431_v38 = vrot.slane %v298_v36, %v302_v35  ;;  %v1433_v39 = vrot.slane %v298_v36, %v306_v37  ;;  %p1116_p11 = scmp.ne.s32.totalorder %s1564_s5, %s1115_s26  ;;  %p1642_p4 = scmp.ne.s32.totalorder %s1633_s23, 0 }
  0x67   : > { %492 = vmatprep.subr.bf16.mxu0 %v1026_v7  ;;  %922 = vmatprep.subr.bf16.mxu1 %v1026_v7  ;;  %s1211_s7 = smov [#allocation7]  }
  0x68   : > { %p1117_p13 = pnand %p1116_p11, %p1642_p4  ;;  %s1119_s6 = sshll.u32 %s1211_s7, 4  ;;  %s1120_s6 = int_to_ptr.vmem [resolvable:$false] %s1119_s6 }
  0x69   : > { %s1121_s9 = scalar_lea.vmem %s1120_s6, 16384  ;;  %p1122_p5 = scmp.lt.s32.totalorder %s1564_s5, %s1120_s6 }
  0x6a   : > { %493 = vmatpush1.bf16.msra.mxu0 %v1028_v8  ;;  %930 = vmatpush1.bf16.msra.mxu1 %v1028_v8  ;;  %p1118_p0 = pneg %p1117_p13  ;;  %p1123_p3 = scmp.lt.s32.totalorder %s1121_s9, %s1115_s26 }
  0x6b   : > { %494 = vmatprep.subr.bf16.mxu0 %v1029_v9  ;;  %923 = vmatprep.subr.bf16.mxu1 %v1029_v9 }
  0x6c   : > { %p1124_p6 = por %p1123_p3, %p1122_p5 }
  0x6e   : > { %495 = vmatpush1.bf16.msra.mxu0 %v1031_v10  ;;  %931 = vmatpush1.bf16.msra.mxu1 %v1031_v10  ;;  %p1125_p12 = pnand %p1124_p6, %p1118_p0 }
  0x6f   : > { %496 = vmatprep.subr.bf16.mxu0 %v1032_v11  ;;  %924 = vmatprep.subr.bf16.mxu1 %v1032_v11 }
  0x72   : > { %497 = vmatpush1.bf16.msra.mxu0 %v1034_v12  ;;  %932 = vmatpush1.bf16.msra.mxu1 %v1034_v12 }
  0x73   : > { %498 = vmatprep.subr.bf16.mxu0 %v1035_v13  ;;  %925 = vmatprep.subr.bf16.mxu1 %v1035_v13 }
  0x76   : > { %499 = vmatpush1.bf16.msra.mxu0 %v1037_v14  ;;  %933 = vmatpush1.bf16.msra.mxu1 %v1037_v14 }
  0x77   : > { %500 = vmatprep.subr.bf16.mxu0 %v1038_v15  ;;  %926 = vmatprep.subr.bf16.mxu1 %v1038_v15 }
  0x7a   : > { %501 = vmatpush1.bf16.msra.mxu0 %v1040_v16  ;;  %934 = vmatpush1.bf16.msra.mxu1 %v1040_v16 }
  0x7d   : > { %519 = vmatmul.mubr.bf16.vlgmr.msra.gmra.mrb[0].mxu0 %v1041_v17  ;;  %599 = vmatmul.mubr.bf16.vlgmr.msra.gmra.mrb[0].mxu1 %v1042_v18 }
  0x7e   : > { %528 = vmatprep.mubr.bf16.mxu0 %v1210_v0  ;;  %608 = vmatprep.mubr.bf16.mxu1 %v1210_v0 }
  0x85   : > { %529 = vmatmul.mubr.bf16.gmra.mrb[4].mxu0 %v1043_v19  ;;  %609 = vmatmul.mubr.bf16.gmra.mrb[4].mxu1 %v1044_v20 }
  0x86   : > { %538 = vmatprep.mubr.bf16.mxu0 %v1210_v0  ;;  %618 = vmatprep.mubr.bf16.mxu1 %v1210_v0 }
  0x8d   : > { %539 = vmatmul.mubr.bf16.gmra.mrb[8].mxu0 %v1045_v21  ;;  %619 = vmatmul.mubr.bf16.gmra.mrb[8].mxu1 %v1046_v22 }
  0x8e   : > { %548 = vmatprep.mubr.bf16.mxu0 %v1210_v0  ;;  %628 = vmatprep.mubr.bf16.mxu1 %v1210_v0 }
  0x95   : > { %549 = vmatmul.mubr.bf16.gmra.mrb[12].mxu0 %v1047_v23  ;;  %629 = vmatmul.mubr.bf16.gmra.mrb[12].mxu1 %v1048_v24 }
  0x96   : > { %558 = vmatprep.mubr.bf16.mxu0 %v1210_v0  ;;  %638 = vmatprep.mubr.bf16.mxu1 %v1210_v0 }
  0x9d   : > { %559 = vmatmul.mubr.bf16.gmra.mrb[16].mxu0 %v1049_v25  ;;  %639 = vmatmul.mubr.bf16.gmra.mrb[16].mxu1 %v1050_v26 }
  0x9e   : > { %568 = vmatprep.mubr.bf16.mxu0 %v1210_v0  ;;  %648 = vmatprep.mubr.bf16.mxu1 %v1210_v0 }
  0xa5   : > { %569 = vmatmul.mubr.bf16.gmra.mrb[20].mxu0 %v1051_v27  ;;  %649 = vmatmul.mubr.bf16.gmra.mrb[20].mxu1 %v1052_v28 }
  0xa6   : > { %578 = vmatprep.mubr.bf16.mxu0 %v1210_v0  ;;  %658 = vmatprep.mubr.bf16.mxu1 %v1210_v0 }
  0xad   : > { %579 = vmatmul.mubr.bf16.gmra.mrb[24].mxu0 %v1053_v29  ;;  %659 = vmatmul.mubr.bf16.gmra.mrb[24].mxu1 %v1054_v30 }
  0xae   : > { %588 = vmatprep.mubr.bf16.mxu0 %v1210_v0  ;;  %668 = vmatprep.mubr.bf16.mxu1 %v1210_v0 }
  0xb5   : > { %589 = vmatmul.mubr.bf16.gmra.mrb[28].mxu0 %v1055_v31  ;;  %669 = vmatmul.mubr.bf16.gmra.mrb[28].mxu1 %v1056_v32 }
 0x150   : > { %v520_v40 = vpop.f32.mrb[0].mxu0  ;;  %v600_v41 = vpop.f32.mrb[0].mxu1 }
 0x151   : > { %v521_v42 = vadd.f32 %v520_v40, %v1431_v38  ;;  %v601_v43 = vadd.f32 %v600_v41, %v1431_v38  ;;  %v522_v44 = vpop.f32.mrb[1].mxu0  ;;  %v602_v45 = vpop.f32.mrb[1].mxu1 }
 0x152   : > { %v523_v46 = vadd.f32 %v522_v44, %v1433_v39  ;;  %v603_v47 = vadd.f32 %v602_v45, %v1433_v39  ;;  %v524_v48 = vpop.f32.mrb[2].mxu0  ;;  %v604_v49 = vpop.f32.mrb[2].mxu1 }
 0x153   : > { %679 = vst [vmem:[%s1439_s11] sm:$0xff] %v521_v42  ;;  %711 = vst [vmem:[%s1439_s11 + $0x100] sm:$0xff] %v601_v43  ;;  %v525_v50 = vadd.f32 %v524_v48, %v1431_v38  ;;  %v605_v51 = vadd.f32 %v604_v49, %v1431_v38  ;;  %v526_v52 = vpop.f32.mrb[3].mxu0  ;;  %v606_v53 = vpop.f32.mrb[3].mxu1 }
 0x154   : > { %680 = vst [vmem:[%s1439_s11 + $0x8] sm:$0xff] %v523_v46  ;;  %712 = vst [vmem:[%s1439_s11 + $0x108] sm:$0xff] %v603_v47  ;;  %v527_v54 = vadd.f32 %v526_v52, %v1433_v39  ;;  %v607_v55 = vadd.f32 %v606_v53, %v1433_v39 }
 0x155   : > { %681 = vst [vmem:[%s1439_s11 + $0x10] sm:$0xff] %v525_v50  ;;  %713 = vst [vmem:[%s1439_s11 + $0x110] sm:$0xff] %v605_v51 }
 0x156   : > { %682 = vst [vmem:[%s1439_s11 + $0x18] sm:$0xff] %v527_v54  ;;  %714 = vst [vmem:[%s1439_s11 + $0x118] sm:$0xff] %v607_v55 }
 0x158   : > { %v530_v56 = vpop.f32.mrb[4].mxu0  ;;  %v610_v57 = vpop.f32.mrb[4].mxu1 }
 0x159   : > { %v531_v58 = vadd.f32 %v530_v56, %v1431_v38  ;;  %v611_v59 = vadd.f32 %v610_v57, %v1431_v38  ;;  %v532_v60 = vpop.f32.mrb[5].mxu0  ;;  %v612_v61 = vpop.f32.mrb[5].mxu1 }
 0x15a   : > { %v533_v62 = vadd.f32 %v532_v60, %v1433_v39  ;;  %v613_v63 = vadd.f32 %v612_v61, %v1433_v39  ;;  %v534_v0 = vpop.f32.mrb[6].mxu0  ;;  %v614_v1 = vpop.f32.mrb[6].mxu1 }
 0x15b   : > { %683 = vst [vmem:[%s1439_s11 + $0x20] sm:$0xff] %v531_v58  ;;  %715 = vst [vmem:[%s1439_s11 + $0x120] sm:$0xff] %v611_v59  ;;  %v535_v2 = vadd.f32 %v534_v0, %v1431_v38  ;;  %v615_v3 = vadd.f32 %v614_v1, %v1431_v38  ;;  %v536_v4 = vpop.f32.mrb[7].mxu0  ;;  %v616_v5 = vpop.f32.mrb[7].mxu1 }
 0x15c   : > { %684 = vst [vmem:[%s1439_s11 + $0x28] sm:$0xff] %v533_v62  ;;  %716 = vst [vmem:[%s1439_s11 + $0x128] sm:$0xff] %v613_v63  ;;  %v537_v6 = vadd.f32 %v536_v4, %v1433_v39  ;;  %v617_v7 = vadd.f32 %v616_v5, %v1433_v39 }
 0x15d   : > { %685 = vst [vmem:[%s1439_s11 + $0x30] sm:$0xff] %v535_v2  ;;  %717 = vst [vmem:[%s1439_s11 + $0x130] sm:$0xff] %v615_v3 }
 0x15e   : > { %686 = vst [vmem:[%s1439_s11 + $0x38] sm:$0xff] %v537_v6  ;;  %718 = vst [vmem:[%s1439_s11 + $0x138] sm:$0xff] %v617_v7 }
 0x160   : > { %v540_v8 = vpop.f32.mrb[8].mxu0  ;;  %v620_v9 = vpop.f32.mrb[8].mxu1 }
 0x161   : > { %v541_v10 = vadd.f32 %v540_v8, %v1431_v38  ;;  %v621_v11 = vadd.f32 %v620_v9, %v1431_v38  ;;  %v542_v12 = vpop.f32.mrb[9].mxu0  ;;  %v622_v13 = vpop.f32.mrb[9].mxu1 }
 0x162   : > { %v543_v14 = vadd.f32 %v542_v12, %v1433_v39  ;;  %v623_v15 = vadd.f32 %v622_v13, %v1433_v39  ;;  %v544_v16 = vpop.f32.mrb[10].mxu0  ;;  %v624_v17 = vpop.f32.mrb[10].mxu1 }
 0x163   : > { %687 = vst [vmem:[%s1439_s11 + $0x40] sm:$0xff] %v541_v10  ;;  %719 = vst [vmem:[%s1439_s11 + $0x140] sm:$0xff] %v621_v11  ;;  %v545_v18 = vadd.f32 %v544_v16, %v1431_v38  ;;  %v625_v19 = vadd.f32 %v624_v17, %v1431_v38  ;;  %v546_v20 = vpop.f32.mrb[11].mxu0  ;;  %v626_v21 = vpop.f32.mrb[11].mxu1 }
 0x164   : > { %688 = vst [vmem:[%s1439_s11 + $0x48] sm:$0xff] %v543_v14  ;;  %720 = vst [vmem:[%s1439_s11 + $0x148] sm:$0xff] %v623_v15  ;;  %v547_v22 = vadd.f32 %v546_v20, %v1433_v39  ;;  %v627_v23 = vadd.f32 %v626_v21, %v1433_v39 }
 0x165   : > { %689 = vst [vmem:[%s1439_s11 + $0x50] sm:$0xff] %v545_v18  ;;  %721 = vst [vmem:[%s1439_s11 + $0x150] sm:$0xff] %v625_v19 }
 0x166   : > { %690 = vst [vmem:[%s1439_s11 + $0x58] sm:$0xff] %v547_v22  ;;  %722 = vst [vmem:[%s1439_s11 + $0x158] sm:$0xff] %v627_v23 }
 0x168   : > { %v550_v24 = vpop.f32.mrb[12].mxu0  ;;  %v630_v25 = vpop.f32.mrb[12].mxu1 }
 0x169   : > { %v551_v26 = vadd.f32 %v550_v24, %v1431_v38  ;;  %v631_v27 = vadd.f32 %v630_v25, %v1431_v38  ;;  %v552_v28 = vpop.f32.mrb[13].mxu0  ;;  %v632_v29 = vpop.f32.mrb[13].mxu1 }
 0x16a   : > { %v553_v30 = vadd.f32 %v552_v28, %v1433_v39  ;;  %v633_v31 = vadd.f32 %v632_v29, %v1433_v39  ;;  %v554_v32 = vpop.f32.mrb[14].mxu0  ;;  %v634_v33 = vpop.f32.mrb[14].mxu1 }
 0x16b   : > { %691 = vst [vmem:[%s1439_s11 + $0x60] sm:$0xff] %v551_v26  ;;  %723 = vst [vmem:[%s1439_s11 + $0x160] sm:$0xff] %v631_v27  ;;  %v555_v34 = vadd.f32 %v554_v32, %v1431_v38  ;;  %v635_v35 = vadd.f32 %v634_v33, %v1431_v38  ;;  %v556_v36 = vpop.f32.mrb[15].mxu0  ;;  %v636_v37 = vpop.f32.mrb[15].mxu1 }
 0x16c   : > { %692 = vst [vmem:[%s1439_s11 + $0x68] sm:$0xff] %v553_v30  ;;  %724 = vst [vmem:[%s1439_s11 + $0x168] sm:$0xff] %v633_v31  ;;  %v557_v40 = vadd.f32 %v556_v36, %v1433_v39  ;;  %v637_v41 = vadd.f32 %v636_v37, %v1433_v39 }
 0x16d   : > { %693 = vst [vmem:[%s1439_s11 + $0x70] sm:$0xff] %v555_v34  ;;  %725 = vst [vmem:[%s1439_s11 + $0x170] sm:$0xff] %v635_v35 }
 0x16e   : > { %694 = vst [vmem:[%s1439_s11 + $0x78] sm:$0xff] %v557_v40  ;;  %726 = vst [vmem:[%s1439_s11 + $0x178] sm:$0xff] %v637_v41 }
 0x170   : > { %v560_v42 = vpop.f32.mrb[16].mxu0  ;;  %v640_v43 = vpop.f32.mrb[16].mxu1 }
 0x171   : > { %v561_v44 = vadd.f32 %v560_v42, %v1431_v38  ;;  %v641_v45 = vadd.f32 %v640_v43, %v1431_v38  ;;  %v562_v46 = vpop.f32.mrb[17].mxu0  ;;  %v642_v47 = vpop.f32.mrb[17].mxu1 }
 0x172   : > { %v563_v48 = vadd.f32 %v562_v46, %v1433_v39  ;;  %v643_v49 = vadd.f32 %v642_v47, %v1433_v39  ;;  %v564_v50 = vpop.f32.mrb[18].mxu0  ;;  %v644_v51 = vpop.f32.mrb[18].mxu1 }
 0x173   : > { %695 = vst [vmem:[%s1439_s11 + $0x80] sm:$0xff] %v561_v44  ;;  %727 = vst [vmem:[%s1439_s11 + $0x180] sm:$0xff] %v641_v45  ;;  %v565_v52 = vadd.f32 %v564_v50, %v1431_v38  ;;  %v645_v53 = vadd.f32 %v644_v51, %v1431_v38  ;;  %v566_v54 = vpop.f32.mrb[19].mxu0  ;;  %v646_v55 = vpop.f32.mrb[19].mxu1 }
 0x174   : > { %696 = vst [vmem:[%s1439_s11 + $0x88] sm:$0xff] %v563_v48  ;;  %728 = vst [vmem:[%s1439_s11 + $0x188] sm:$0xff] %v643_v49  ;;  %v567_v56 = vadd.f32 %v566_v54, %v1433_v39  ;;  %v647_v57 = vadd.f32 %v646_v55, %v1433_v39 }
 0x175   : > { %697 = vst [vmem:[%s1439_s11 + $0x90] sm:$0xff] %v565_v52  ;;  %729 = vst [vmem:[%s1439_s11 + $0x190] sm:$0xff] %v645_v53 }
 0x176   : > { %698 = vst [vmem:[%s1439_s11 + $0x98] sm:$0xff] %v567_v56  ;;  %730 = vst [vmem:[%s1439_s11 + $0x198] sm:$0xff] %v647_v57 }
 0x178   : > { %v570_v58 = vpop.f32.mrb[20].mxu0  ;;  %v650_v59 = vpop.f32.mrb[20].mxu1 }
 0x179   : > { %v571_v60 = vadd.f32 %v570_v58, %v1431_v38  ;;  %v651_v61 = vadd.f32 %v650_v59, %v1431_v38  ;;  %v572_v62 = vpop.f32.mrb[21].mxu0  ;;  %v652_v63 = vpop.f32.mrb[21].mxu1 }
 0x17a   : > { %v573_v0 = vadd.f32 %v572_v62, %v1433_v39  ;;  %v653_v1 = vadd.f32 %v652_v63, %v1433_v39  ;;  %v574_v2 = vpop.f32.mrb[22].mxu0  ;;  %v654_v3 = vpop.f32.mrb[22].mxu1 }
 0x17b   : > { %699 = vst [vmem:[%s1439_s11 + $0xa0] sm:$0xff] %v571_v60  ;;  %731 = vst [vmem:[%s1439_s11 + $0x1a0] sm:$0xff] %v651_v61  ;;  %v575_v4 = vadd.f32 %v574_v2, %v1431_v38  ;;  %v655_v5 = vadd.f32 %v654_v3, %v1431_v38  ;;  %v576_v6 = vpop.f32.mrb[23].mxu0  ;;  %v656_v7 = vpop.f32.mrb[23].mxu1 }
 0x17c   : > { %700 = vst [vmem:[%s1439_s11 + $0xa8] sm:$0xff] %v573_v0  ;;  %732 = vst [vmem:[%s1439_s11 + $0x1a8] sm:$0xff] %v653_v1  ;;  %v577_v8 = vadd.f32 %v576_v6, %v1433_v39  ;;  %v657_v9 = vadd.f32 %v656_v7, %v1433_v39 }
 0x17d   : > { %701 = vst [vmem:[%s1439_s11 + $0xb0] sm:$0xff] %v575_v4  ;;  %733 = vst [vmem:[%s1439_s11 + $0x1b0] sm:$0xff] %v655_v5 }
 0x17e   : > { %702 = vst [vmem:[%s1439_s11 + $0xb8] sm:$0xff] %v577_v8  ;;  %734 = vst [vmem:[%s1439_s11 + $0x1b8] sm:$0xff] %v657_v9 }
 0x180   : > { %v580_v10 = vpop.f32.mrb[24].mxu0  ;;  %v660_v11 = vpop.f32.mrb[24].mxu1 }
 0x181   : > { %v581_v12 = vadd.f32 %v580_v10, %v1431_v38  ;;  %v661_v13 = vadd.f32 %v660_v11, %v1431_v38  ;;  %v582_v14 = vpop.f32.mrb[25].mxu0  ;;  %v662_v15 = vpop.f32.mrb[25].mxu1 }
 0x182   : > { %v583_v16 = vadd.f32 %v582_v14, %v1433_v39  ;;  %v663_v17 = vadd.f32 %v662_v15, %v1433_v39  ;;  %v584_v18 = vpop.f32.mrb[26].mxu0  ;;  %v664_v19 = vpop.f32.mrb[26].mxu1 }
 0x183   : > { %703 = vst [vmem:[%s1439_s11 + $0xc0] sm:$0xff] %v581_v12  ;;  %735 = vst [vmem:[%s1439_s11 + $0x1c0] sm:$0xff] %v661_v13  ;;  %v585_v20 = vadd.f32 %v584_v18, %v1431_v38  ;;  %v665_v21 = vadd.f32 %v664_v19, %v1431_v38  ;;  %v586_v22 = vpop.f32.mrb[27].mxu0  ;;  %v666_v23 = vpop.f32.mrb[27].mxu1 }
 0x184   : > { %704 = vst [vmem:[%s1439_s11 + $0xc8] sm:$0xff] %v583_v16  ;;  %736 = vst [vmem:[%s1439_s11 + $0x1c8] sm:$0xff] %v663_v17  ;;  %v587_v24 = vadd.f32 %v586_v22, %v1433_v39  ;;  %v667_v25 = vadd.f32 %v666_v23, %v1433_v39 }
 0x185   : > { %705 = vst [vmem:[%s1439_s11 + $0xd0] sm:$0xff] %v585_v20  ;;  %737 = vst [vmem:[%s1439_s11 + $0x1d0] sm:$0xff] %v665_v21 }
 0x186   : > { %706 = vst [vmem:[%s1439_s11 + $0xd8] sm:$0xff] %v587_v24  ;;  %738 = vst [vmem:[%s1439_s11 + $0x1d8] sm:$0xff] %v667_v25 }
 0x188   : > { %v590_v26 = vpop.f32.mrb[28].mxu0  ;;  %v670_v27 = vpop.f32.mrb[28].mxu1 }
 0x189   : > { %v591_v28 = vadd.f32 %v590_v26, %v1431_v38  ;;  %v671_v29 = vadd.f32 %v670_v27, %v1431_v38  ;;  %v592_v30 = vpop.f32.mrb[29].mxu0  ;;  %v672_v31 = vpop.f32.mrb[29].mxu1 }
 0x18a   : > { %v593_v32 = vadd.f32 %v592_v30, %v1433_v39  ;;  %v673_v33 = vadd.f32 %v672_v31, %v1433_v39  ;;  %v594_v34 = vpop.f32.mrb[30].mxu0  ;;  %v674_v35 = vpop.f32.mrb[30].mxu1 }
 0x18b   : > { %707 = vst [vmem:[%s1439_s11 + $0xe0] sm:$0xff] %v591_v28  ;;  %739 = vst [vmem:[%s1439_s11 + $0x1e0] sm:$0xff] %v671_v29  ;;  %v595_v36 = vadd.f32 %v594_v34, %v1431_v38  ;;  %v675_v37 = vadd.f32 %v674_v35, %v1431_v38  ;;  %v596_v40 = vpop.f32.mrb[31].mxu0  ;;  %v676_v41 = vpop.f32.mrb[31].mxu1 }
 0x18c   : > { %708 = vst [vmem:[%s1439_s11 + $0xe8] sm:$0xff] %v593_v32  ;;  %740 = vst [vmem:[%s1439_s11 + $0x1e8] sm:$0xff] %v673_v33  ;;  %v597_v42 = vadd.f32 %v596_v40, %v1433_v39  ;;  %v677_v43 = vadd.f32 %v676_v41, %v1433_v39 }
 0x18d   : > { %709 = vst [vmem:[%s1439_s11 + $0xf0] sm:$0xff] %v595_v36  ;;  %741 = vst [vmem:[%s1439_s11 + $0x1f0] sm:$0xff] %v675_v37 }
 0x18e   : > { %710 = vst [vmem:[%s1439_s11 + $0xf8] sm:$0xff] %v597_v42  ;;  %742 = vst [vmem:[%s1439_s11 + $0x1f8] sm:$0xff] %v677_v43 }
 0x18f   : > { %1128 = shalt.err (!%p1125_p12)
}
 0x190   : > { %s1129_s4 = scalar_lea.hbm %s1558_s27, 8192  ;;  %s1133_s25 = scalar_lea.hbm %s1623_s3, 24576 }
 0x191   : > { %p1130_p2 = scmp.ne.s32.totalorder %s1558_s27, %s1129_s4  ;;  %p1134_p1 = scmp.lt.u32.totalorder %s1558_s27, %s1623_s3 }
 0x192   : > { %p1135_p8 = scmp.lt.u32.totalorder %s1133_s25, %s1129_s4  ;;  %p1137_p11 = scmp.lt.u32.totalorder %s1129_s4, %s1558_s27 }
 0x193   : > { %p1131_p7 = pnand %p1130_p2, %p1642_p4 }
 0x194   : > { %p1136_p9 = por %p1135_p8, %p1134_p1 }
 0x195   : > { %p1132_p10 = pneg %p1131_p7 }
 0x196   : > { %p1138_p13 = por %p1137_p11, %p1136_p9 }
 0x198   : > { %p1139_p0 = pnand %p1138_p13, %p1132_p10 }
 0x19a   : > { %1142 = shalt.err (!%p1139_p0)
}
 0x19b   : > { %s1212_s11 = smov 256   ;;  %s1213_s19 = smov 768  }
 0x19c   : > { %s1214_s15 = smov 16  }
 0x19d   : > { %941 = dma.vmem_to_hbm [thread:$0]  (%p1642_p4), %s1564_s5, 8192, %s1558_s27, %s744_s21, %s1212_s11, %s1213_s19, %s1214_s15  }
 0x19e PF: > { %p958_p5 = scmp.ge.s32.totalorder %s1201_s17, 2  ;;  %s775_s10 = sand.u32 1, %s1181_s12  }
 0x19f   : > { %p1643_p3 = scmp.ne.s32.totalorder %s1634_s24, 0  ;;  %s776_s26 = scalar_lea.sflag [#allocation4], %s775_s10 }
 0x1a1   : > { %p952_p6 = pnand %p958_p5, %p1643_p3 }
 0x1a3   : > { %1176 = dma.done.wait (!%p952_p6), %s776_s26, 8192  }
 0x1a4   : > { %1178 = vsyncadd (!%p952_p6), %s776_s26, 4294959104  ;;  %s20_s17 = sadd.s32 1, %s1201_s17   ;;  %s1644_s12 = smov %s1185_s13 }
 0x1a5   : > { %p17_p12 = scmp.ge.s32.totalorder %s20_s17, 5   ;;  %s1645_s13 = smov %s1189_s14 }
 0x1a6   : > { %s1646_s14 = smov %s1345_s18  ;;  %s1647_s15 = smov %s1197_s16 }
 0x1a7   : > { %s1648_s16 = smov %s1650_s30  ;;  %19 = sbr.rel (!%p17_p12) target bundleno = 7 (0x7), region = 86 }
 0x1ae   :  { %781 = vsyncpa [#allocation3], 1 }
 0x1af   :  { %783 = vsyncpa [#allocation3 + $0x1], 1 }
 0x1b0   :  { %784 = vsyncpa [#allocation6], 1 }
 0x1b1   :  { %786 = vsyncpa [#allocation6 + $0x1], 1 }
 0x1b2   :  { %787 = vsyncpa [#allocation4], 1 }
 0x1b3   :  { %789 = vsyncpa [#allocation4 + $0x1], 1 }

</bundles_post_ra>
